<compile_context>
chip_gen: v5e
topology: v5e:2x2
jax: 0.10.0
libtpu: 0.0.40
codegen_flags: <defaults>
</compile_context>

<pallas_src>
import functools
import math

import jax
import jax.numpy as jnp
from jax.experimental import pallas as pl
from jax.experimental.pallas import tpu as pltpu

INPUT_DIM = int(128 * (128 / 16) * (128 / 16) / 8)   # 1024
BN_EPS = 1e-5
DOT_PREC = jax.lax.Precision.HIGHEST
VMEM_LIMIT = 64 * 1024 * 1024                         # fits v7x 64 MiB physical
TAPS2 = 8                                             # 2*2*2 taps of the k=2 deconv
PACK = 16                                             # spatial positions per 128-lane row


def _sigmoid(v):
    return 1.0 / (1.0 + jnp.exp(-v))


# ----------------------------------------------------------------------------
# Pallas kernels
# ----------------------------------------------------------------------------
def _matmul_kernel(a_ref, b_ref, o_ref):
    o_ref[...] = jnp.dot(a_ref[...], b_ref[...],
                         preferred_element_type=jnp.float32,
                         precision=DOT_PREC)


def _l5l6_kernel(x_ref, w5b_ref, w6b_ref, o_ref):
    """Fused layer5 (k=2,s=2 deconv + sigmoid) and layer6 (1x1 conv + sigmoid).

    x_ref:   (tm, 128)   = 16 spatial positions x 8 input channels per row
    w5b_ref: (128, 1024) = block-diag(16 x w5(8,64))
    w6b_ref: (1024, 128) = block-diag(16 x P(64,8)), P[tap*8+c, tap] = w6[c]
    o_ref:   (tm, 128)   = 16 spatial positions x 8 output taps per row
    """
    y = _sigmoid(jnp.dot(x_ref[...], w5b_ref[...],
                         preferred_element_type=jnp.float32,
                         precision=DOT_PREC))
    o_ref[...] = _sigmoid(jnp.dot(y, w6b_ref[...],
                                  preferred_element_type=jnp.float32,
                                  precision=DOT_PREC))


def _bn_relu_kernel(x_ref, gamma_ref, beta_ref, fold_ref, o_ref, *, inv_count):
    """Single-pass BatchNorm (batch stats) + ReLU on a lane-packed slab.

    x_ref:    (R, L) with L = groups*C (small C packed to 128 lanes)
    fold_ref: (L, L) 0/1 matrix that sums lanes of the same channel and
              broadcasts the result back to every group copy of that channel.
    """
    x = x_ref[...]
    m = fold_ref[...]
    sum_l = jnp.sum(x, axis=0, keepdims=True)                       # (1, L)
    mean_l = jnp.dot(sum_l, m, preferred_element_type=jnp.float32,
                     precision=DOT_PREC) * inv_count                # (1, L)
    d = x - mean_l
    var_l = jnp.dot(jnp.sum(d * d, axis=0, keepdims=True), m,
                    preferred_element_type=jnp.float32,
                    precision=DOT_PREC) * inv_count                 # (1, L)
    scale_l = gamma_ref[...] * jax.lax.rsqrt(var_l + BN_EPS)
    shift_l = beta_ref[...] - mean_l * scale_l
    o_ref[...] = jnp.maximum(x * scale_l + shift_l, 0.0)


# ----------------------------------------------------------------------------
# Pallas wrappers
# ----------------------------------------------------------------------------
def pallas_matmul(a, b):
    """(M, K) @ (K, N) -> (M, N), full-K blocks, grid over (M, N) tiles."""
    M, K = a.shape
    K2, N = b.shape
    assert K == K2
    tm = M if M <= 2048 else math.gcd(M, 2048)
    tn = N if N <= 2048 else math.gcd(N, 2048)
    # Keep >=2 grid steps on sizable single-tile problems (v7x megacore).
    if M // tm == 1 and N // tn == 1 and M >= 1024 and (M // 2) % 8 == 0:
        tm = M // 2
    assert M % tm == 0 and N % tn == 0
    return pl.pallas_call(
        _matmul_kernel,
        out_shape=jax.ShapeDtypeStruct((M, N), jnp.float32),
        grid=(M // tm, N // tn),
        in_specs=[pl.BlockSpec((tm, K), lambda i, j: (i, 0)),
                  pl.BlockSpec((K, tn), lambda i, j: (0, j))],
        out_specs=pl.BlockSpec((tm, tn), lambda i, j: (i, j)),
        compiler_params=pltpu.CompilerParams(
            dimension_semantics=("parallel", "parallel"),
            vmem_limit_bytes=VMEM_LIMIT),
    )(a, b)


def batchnorm_relu(x, gamma, beta):
    """BatchNorm3d (training-mode batch stats) + ReLU, single fused pass."""
    B, D, H, W, C = x.shape
    n_spatial = B * D * H * W
    if C < 128:
        assert 128 % C == 0
        g = 128 // C                       # pack small C to 128 lanes
    else:
        g = 1
    assert n_spatial % g == 0
    R = n_spatial // g
    L = g * C
    x2d = x.reshape(R, L)                  # free row-major reshape

    gamma_l = jnp.tile(gamma.reshape(1, C), (1, g))
    beta_l = jnp.tile(beta.reshape(1, C), (1, g))
    fold = jnp.tile(jnp.eye(C, dtype=jnp.float32), (g, g))          # (L, L)

    # Column-split the grid when channels alone fill the lanes (C >= 256)
    # so the (tiny) BN kernels still expose >=2 parallel steps on megacore.
    tc = 256 if (g == 1 and C % 256 == 0) else L
    grid_c = L // tc

    kern = functools.partial(_bn_relu_kernel, inv_count=1.0 / float(n_spatial))
    out = pl.pallas_call(
        kern,
        out_shape=jax.ShapeDtypeStruct((R, L), jnp.float32),
        grid=(grid_c,),
        in_specs=[pl.BlockSpec((R, tc), lambda j: (0, j)),
                  pl.BlockSpec((1, tc), lambda j: (0, j)),
                  pl.BlockSpec((1, tc), lambda j: (0, j)),
                  pl.BlockSpec((tc, tc), lambda j: (j, j))],
        out_specs=pl.BlockSpec((R, tc), lambda j: (0, j)),
        compiler_params=pltpu.CompilerParams(
            dimension_semantics=("parallel",),
            vmem_limit_bytes=VMEM_LIMIT),
    )(x2d, gamma_l, beta_l, fold)
    return out.reshape(B, D, H, W, C)
    # TODO(synk): running_mean / running_var buffer updates (stateful, no
    # effect on the forward output) are not materialized.


# ----------------------------------------------------------------------------
# ConvTranspose3d layers
# ----------------------------------------------------------------------------
def _col2vox_k4s2p1(y, B, Di, Hi, Wi, C):
    """Overlap-add for ConvTranspose3d(kernel=4, stride=2, pad=1).

    y: (B, Di, Hi, Wi, 4, 4, 4, C).  Output element o_d = 2*i_d - 1 + k_d.
    Split k = 2q + r; contributions land at padded index 2*(i+q) + r.
    """
    # TODO(synk): overlap-add + interleave kept as XLA glue; could be folded
    # into a Pallas epilogue of the conv matmul to avoid the stack/transpose.
    parts = []
    for rd in (0, 1):
        for rh in (0, 1):
            for rw in (0, 1):
                acc = jnp.zeros((B, Di + 1, Hi + 1, Wi + 1, C), jnp.float32)
                for qd in (0, 1):
                    for qh in (0, 1):
                        for qw in (0, 1):
                            t = y[:, :, :, :, 2 * qd + rd, 2 * qh + rh, 2 * qw + rw, :]
                            acc = acc + jnp.pad(
                                t, ((0, 0), (qd, 1 - qd), (qh, 1 - qh), (qw, 1 - qw), (0, 0)))
                parts.append(acc)
    p = jnp.stack(parts, axis=0).reshape(2, 2, 2, B, Di + 1, Hi + 1, Wi + 1, C)
    # (rd, rh, rw, b, md, mh, mw, c) -> (b, md, rd, mh, rh, mw, rw, c)
    accf = p.transpose(3, 4, 0, 5, 1, 6, 2, 7).reshape(
        B, 2 * Di + 2, 2 * Hi + 2, 2 * Wi + 2, C)
    return accf[:, 1:1 + 2 * Di, 1:1 + 2 * Hi, 1:1 + 2 * Wi, :]


def conv_t_k4s2p1(x, w):
    """ConvTranspose3d(Cin->Cout, k=4, s=2, p=1, bias=False). x: (B,D,H,W,Cin)."""
    B, D, H, W, Cin = x.shape
    Cout = w.shape[-1]
    y = pallas_matmul(x.reshape(B * D * H * W, Cin), w.reshape(Cin, 64 * Cout))
    y = y.reshape(B, D, H, W, 4, 4, 4, Cout)
    return _col2vox_k4s2p1(y, B, D, H, W, Cout)


def conv_l5_l6_fused(x, w5, w6):
    """Fused layer5 + layer6:  sigmoid(ConvT(8->8,k=2,s=2)) -> sigmoid(ConvT(8->1,k=1)).

    x: (B, D, H, W, 8).  Returns (B, 2D, 2H, 2W) single-channel volume.
    Both contractions are lane-dense (128-wide) via block-diagonal weights;
    the spatial 2x2x2 interleave runs on the final 1-channel volume only.
    """
    B, D, H, W, Cin = x.shape
    Cout5 = w5.shape[-1]
    assert PACK * Cin == 128
    N = B * D * H * W
    assert N % PACK == 0
    M = N // PACK

    w5r = w5.reshape(Cin, TAPS2 * Cout5)                                  # (8, 64)
    p_mat = jnp.kron(jnp.eye(TAPS2, dtype=jnp.float32),
                     w6.reshape(Cout5, 1))                                # (64, 8)
    w5b = jnp.kron(jnp.eye(PACK, dtype=jnp.float32), w5r)                 # (128, 1024)
    w6b = jnp.kron(jnp.eye(PACK, dtype=jnp.float32), p_mat)               # (1024, 128)

    x2d = x.reshape(M, PACK * Cin)                                        # (M, 128)
    l_in = PACK * Cin
    l_mid = PACK * TAPS2 * Cout5
    l_out = PACK * TAPS2
    tm = math.gcd(M, 512)

    out = pl.pallas_call(
        _l5l6_kernel,
        out_shape=jax.ShapeDtypeStruct((M, l_out), jnp.float32),
        grid=(M // tm,),
        in_specs=[pl.BlockSpec((tm, l_in), lambda i: (i, 0)),
                  pl.BlockSpec((l_in, l_mid), lambda i: (0, 0)),
                  pl.BlockSpec((l_mid, l_out), lambda i: (0, 0))],
        out_specs=pl.BlockSpec((tm, l_out), lambda i: (i, 0)),
        compiler_params=pltpu.CompilerParams(
            dimension_semantics=("parallel",),
            vmem_limit_bytes=VMEM_LIMIT),
    )(x2d, w5b, w6b)

    y = out.reshape(B, D, H, W, 2, 2, 2)
    y = y.transpose(0, 1, 4, 2, 5, 3, 6).reshape(B, 2 * D, 2 * H, 2 * W)
    return y


# ----------------------------------------------------------------------------
# Full decoder forward
# ----------------------------------------------------------------------------
def init_params(key):
    p = {}
    specs = [("w1", INPUT_DIM, 512, 4), ("w2", 512, 128, 4), ("w3", 128, 32, 4),
             ("w4", 32, 8, 4), ("w5", 8, 8, 2), ("w6", 8, 1, 1)]
    keys = jax.random.split(key, len(specs))
    for k, (name, cin, cout, ksz) in zip(keys, specs):
        std = 1.0 / jnp.sqrt(float(cin * ksz ** 3))
        p[name] = (jax.random.normal(k, (cin, ksz, ksz, ksz, cout), jnp.float32)
                   * std)
    for i, c in zip((1, 2, 3, 4), (512, 128, 32, 8)):   # PyTorch BN defaults
        p[f"g{i}"] = jnp.ones((c,), jnp.float32)
        p[f"b{i}"] = jnp.zeros((c,), jnp.float32)
    return p


@jax.jit
def decoder_forward(x, params):
    B = x.shape[0]
    x = x.reshape(B, INPUT_DIM, 2, 2, 2)           # x.view(-1, 1024, 2, 2, 2)
    h = jnp.transpose(x, (0, 2, 3, 4, 1))          # NCDHW -> NDHWC

    h = conv_t_k4s2p1(h, params["w1"])
    h = batchnorm_relu(h, params["g1"], params["b1"])     # (B, 4, 4, 4, 512)

    h = conv_t_k4s2p1(h, params["w2"])
    h = batchnorm_relu(h, params["g2"], params["b2"])     # (B, 8, 8, 8, 128)

    h = conv_t_k4s2p1(h, params["w3"])
    h = batchnorm_relu(h, params["g3"], params["b3"])     # (B, 16, 16, 16, 32)

    h = conv_t_k4s2p1(h, params["w4"])
    h = batchnorm_relu(h, params["g4"], params["b4"])     # (B, 32, 32, 32, 8)

    h = conv_l5_l6_fused(h, params["w5"], params["w6"])   # (B, 64, 64, 64)

    return h[:, None]                                     # -> (B, 1, 64, 64, 64)


# ----------------------------------------------------------------------------
# Self-checks against naive references (small shapes)
# ----------------------------------------------------------------------------
def _check_conv_t_k4s2p1():
    import numpy as np
    rng = np.random.RandomState(0)
    B, D, Ci, Co = 1, 2, 8, 8
    x = (rng.randn(B, D, D, D, Ci) * 0.5).astype(np.float32)
    w = (rng.randn(Ci, 4, 4, 4, Co) * 0.1).astype(np.float32)
    got = np.asarray(conv_t_k4s2p1(jnp.asarray(x), jnp.asarray(w)))
    Do = 2 * D
    ref = np.zeros((B, Do, Do, Do, Co), np.float32)
    for i in range(D):
        for j in range(D):
            for l in range(D):
                for kd in range(4):
                    od = 2 * i - 1 + kd
                    if od < 0 or od >= Do:
                        continue
                    for kh in range(4):
                        oh = 2 * j - 1 + kh
                        if oh < 0 or oh >= Do:
                            continue
                        for kw in range(4):
                            ow = 2 * l - 1 + kw
                            if ow < 0 or ow >= Do:
                                continue
                            ref[:, od, oh, ow, :] += x[:, i, j, l, :] @ w[:, kd, kh, kw, :]
    np.testing.assert_allclose(got, ref, rtol=1e-3, atol=1e-4)


def _check_conv_l5_l6():
    import numpy as np
    rng = np.random.RandomState(1)
    B, D = 1, 4
    x = rng.randn(B, D, D, D, 8).astype(np.float32)
    w5 = (rng.randn(8, 2, 2, 2, 8) * 0.3).astype(np.float32)
    w6 = (rng.randn(8, 1, 1, 1, 1) * 0.3).astype(np.float32)
    got = np.asarray(conv_l5_l6_fused(jnp.asarray(x), jnp.asarray(w5), jnp.asarray(w6)))
    t = np.einsum('bdhwc,ckmnj->bdhwkmnj', x, w5)
    t = 1.0 / (1.0 + np.exp(-t))
    o = np.einsum('bdhwkmnj,j->bdhwkmn', t, w6.reshape(8))
    o = 1.0 / (1.0 + np.exp(-o))
    ref = o.transpose(0, 1, 4, 2, 5, 3, 6).reshape(B, 2 * D, 2 * D, 2 * D)
    np.testing.assert_allclose(got, ref, rtol=1e-4, atol=1e-5)


def _check_batchnorm_relu():
    import numpy as np
    rng = np.random.RandomState(2)
    B, D, C = 2, 4, 8
    x = (rng.randn(B, D, D, D, C) * 2.0 + 0.5).astype(np.float32)
    gamma = (rng.rand(C) + 0.5).astype(np.float32)
    beta = (rng.randn(C) * 0.1).astype(np.float32)
    got = np.asarray(batchnorm_relu(jnp.asarray(x), jnp.asarray(gamma), jnp.asarray(beta)))
    mean = x.reshape(-1, C).mean(0)
    var = x.reshape(-1, C).var(0)
    ref = np.maximum((x - mean) / np.sqrt(var + BN_EPS) * gamma + beta, 0.0)
    np.testing.assert_allclose(got, ref, rtol=1e-4, atol=1e-5)


if __name__ == "__main__":
    _check_conv_t_k4s2p1()
    _check_conv_l5_l6()
    _check_batchnorm_relu()

    key = jax.random.PRNGKey(0)
    k_in, k_par = jax.random.split(key)
    batch = 2
    x = jax.random.normal(k_in, (batch, INPUT_DIM, 2, 2, 2), jnp.float32)
    params = init_params(k_par)

    out = decoder_forward(x, params)
    out = jax.block_until_ready(out)

    assert out.shape == (batch, 1, 64, 64, 64), out.shape
    assert bool(jnp.all(jnp.isfinite(out)))
    assert bool(jnp.all((out >= 0.0) & (out <= 1.0)))   # sigmoid output range
    print("KERNEL_OK")
</pallas_src>

<mosaic_0001>
module attributes {stable_mosaic.version = 11 : i64} {
  func.func @_matmul_kernel(%arg0: i32, %arg1: i32, %arg2: memref<8x8xf32, #tpu.memory_space<vmem>>, %arg3: memref<8x512xf32, #tpu.memory_space<vmem>>, %arg4: memref<8x512xf32, #tpu.memory_space<vmem>>) attributes {dimension_semantics = [#tpu.dimension_semantics<parallel>, #tpu.dimension_semantics<parallel>], iteration_bounds = array<i64: 1, 1>, scalar_prefetch = 0 : i64, scratch_operands = 0 : i64, tpu.core_type = #tpu.core_type<tc>, window_params = [{transform_indices = @transform_0, window_bounds = array<i64: 8, 8>}, {transform_indices = @transform_1, window_bounds = array<i64: 8, 512>}, {transform_indices = @transform_2, window_bounds = array<i64: 8, 512>}]} {
    %c0 = arith.constant 0 : index
    %c0_0 = arith.constant 0 : index
    %0 = vector.load %arg2[%c0, %c0_0] : memref<8x8xf32, #tpu.memory_space<vmem>>, vector<8x8xf32>
    %c0_1 = arith.constant 0 : index
    %c0_2 = arith.constant 0 : index
    %1 = vector.load %arg3[%c0_1, %c0_2] : memref<8x512xf32, #tpu.memory_space<vmem>>, vector<8x512xf32>
    %cst = arith.constant dense<0.000000e+00> : vector<8x512xf32>
    %2 = tpu.matmul %0, %1, %cst {dimension_numbers = #tpu.dot_dimension_numbers<[1], [0], [0], [1], [0, 0, 1, 1], [], []>, precision = #tpu.contract_precision<fp32>} : vector<8x8xf32>, vector<8x512xf32>, vector<8x512xf32> -> vector<8x512xf32>
    %c0_3 = arith.constant 0 : index
    %c0_4 = arith.constant 0 : index
    %3 = vector.load %arg4[%c0_3, %c0_4] : memref<8x512xf32, #tpu.memory_space<vmem>>, vector<8x512xf32>
    tpu.vector_store %arg4[%c0_3, %c0_4], %2 {strides = array<i32>} : memref<8x512xf32, #tpu.memory_space<vmem>>, vector<8x512xf32>,
    return
  }
  func.func @transform_0(%arg0: i32, %arg1: i32) -> (i32, i32) {
    %c0_i32 = arith.constant 0 : i32
    %c0_i32_0 = arith.constant 0 : i32
    return %arg0, %c0_i32 : i32, i32
  }
  func.func @transform_1(%arg0: i32, %arg1: i32) -> (i32, i32) {
    %c0_i32 = arith.constant 0 : i32
    %c0_i32_0 = arith.constant 0 : i32
    return %c0_i32, %arg1 : i32, i32
  }
  func.func @transform_2(%arg0: i32, %arg1: i32) -> (i32, i32) {
    %c0_i32 = arith.constant 0 : i32
    return %arg0, %arg1 : i32, i32
  }
}

</mosaic_0001>

<bundles_post_ra>
// kernel: tpu_custom_call.1
= control target key start
LH: loop header
LB: loop body
LE: loop exit
PB: predicated region body
PF: predicated region fallthrough
CT: control target
= control target key end

     0   :  { %7 = vsyncpa [#allocation3], 0  ;;  %s778_s0 = inlined_call_operand.hbm [shape: f32[8,8], index: 0, kind: input, shape index: {}]   ;;  %s779_s1 = inlined_call_operand.hbm [shape: f32[8,512], index: 1, kind: input, shape index: {}]   ;;  %s780_s2 = inlined_call_operand.hbm [shape: f32[8,512], index: 2, kind: output, shape index: {}]  }
   0x1   :  { %8 = vsyncpa [#allocation6], 0 }
   0x2   :  { %9 = vsyncpa [#allocation4], 0  ;;  %s15_s11 = sshll.u32 %s778_s0, 4  ;;  %s736_s12 = smov [#allocation2]   ;;  %s16_s11 = int_to_ptr.hbm [resolvable:$true] %s15_s11 }
   0x3   :  { %s17_s13 = sshll.u32 %s736_s12, 4  ;;  %s26_s16 = sshll.u32 %s779_s1, 4  ;;  %s18_s13 = int_to_ptr.vmem [resolvable:$true] %s17_s13  ;;  %s27_s16 = int_to_ptr.hbm [resolvable:$true] %s26_s16 }
   0x4   :  { %20 = dma.hbm_to_vmem [thread:$0]  %s16_s11, 128, %s18_s13, [#allocation3]  }
   0x5   :  { %s737_s17 = smov [#allocation5]  }
   0x6   :  { %s28_s18 = sshll.u32 %s737_s17, 4  ;;  %s29_s18 = int_to_ptr.vmem [resolvable:$true] %s28_s18 }
   0x7   :  { %31 = dma.hbm_to_vmem [thread:$0]  %s27_s16, 512, %s29_s18, [#allocation6]  }
   0x8   :  { %730 = dma.done.wait [#allocation3], 128  }
   0x9   :  { %731 = vsyncadd [#allocation3], 4294967168 }
   0xa   :  { %732 = dma.done.wait [#allocation6], 512  }
   0xb   :  { %733 = vsyncadd [#allocation6], 4294966784  ;;  %vm45_vm0 = vcmask 64512   ;;  %v41_v0 = vld [vmem:[#allocation5] sm:$0xff]  ;;  %v40_v1 = vld [vmem:[#allocation2] sm:$0xff]  ;;  %s738_s0 = smov [#allocation7]  }
   0xc   :  { %v42_v2 = vld [vmem:[#allocation5 + $0x8] sm:$0xff]  ;;  %v64_v3 = vand.u32 4294901760, %v41_v0  ;;  %v47_v4 = vsel %vm45_vm0, %v40_v1, 0  ;;  %v43_v6 = vld [vmem:[#allocation5 + $0x10] sm:$0xff]  ;;  %v44_v9 = vld [vmem:[#allocation5 + $0x18] sm:$0xff]  ;;  %s642_s1 = sshll.u32 %s738_s0, 4  ;;  %s643_s1 = int_to_ptr.vmem [resolvable:$true] %s642_s1 }
   0xd   :  { %v210_v5 = vand.u32 4294901760, %v42_v2  ;;  %v760_v7 = vand.u32 4294901760, %v47_v4  ;;  %v356_v8 = vand.u32 4294901760, %v43_v6  ;;  %v502_v16 = vand.u32 4294901760, %v44_v9  ;;  %s644_s21 = sshll.u32 %s780_s2, 4  ;;  %s645_s21 = int_to_ptr.hbm [resolvable:$true] %s644_s21 }
   0xe   :  { %v91_v10 = vsub.f32 %v41_v0, %v64_v3  ;;  %141 = vmatpush.msra.mxu3 %v64_v3  ;;  %65 = vmatpush.msra.mxu0 %v64_v3 }
   0xf   :  { %v237_v11 = vsub.f32 %v42_v2, %v210_v5  ;;  %v67_v12 = vsub.f32 %v47_v4, %v760_v7  ;;  %v383_v15 = vsub.f32 %v43_v6, %v356_v8  ;;  %v529_v24 = vsub.f32 %v44_v9, %v502_v16 }
  0x10   :  { %118 = vmatpush.msra.mxu2 %v91_v10  ;;  %v92_v13 = vand.u32 4294901760, %v91_v10 }
  0x11   :  { %v238_v14 = vand.u32 4294901760, %v237_v11  ;;  %121 = vmatmul.f32.vlgmr.msra.gmra.mxu2 %v67_v12  ;;  %v68_v17 = vand.u32 4294901760, %v67_v12  ;;  %v384_v23 = vand.u32 4294901760, %v383_v15  ;;  %v530_v27 = vand.u32 4294901760, %v529_v24 }
  0x12   :  { %211 = vmatpush.msrb.mxu2 %v210_v5  ;;  %v93_v18 = vsub.f32 %v91_v10, %v92_v13  ;;  %167 = vmatpush.msrb.mxu0 %v92_v13 }
  0x13   :  { %v239_v19 = vsub.f32 %v237_v11, %v238_v14  ;;  %145 = vmatmul.f32.vlgmr.msra.gmra.mxu3 %v68_v17  ;;  %v69_v20 = vsub.f32 %v67_v12, %v68_v17  ;;  %v385_v26 = vsub.f32 %v383_v15, %v384_v23  ;;  %v531_v29 = vsub.f32 %v529_v24, %v530_v27 }
  0x14   :  { %313 = vmatpush.msra.mxu2 %v238_v14  ;;  %v94_v21 = vand.u32 4294901760, %v93_v18 }
  0x15   :  { %v240_v22 = vand.u32 4294901760, %v239_v19  ;;  %v70_v25 = vand.u32 4294901760, %v69_v20  ;;  %v386_v28 = vand.u32 4294901760, %v385_v26  ;;  %v532_v30 = vand.u32 4294901760, %v531_v29 }
  0x16   :  { %95 = vmatpush.msra.mxu1 %v94_v21 }
  0x17   :  { %241 = vmatpush.msrb.mxu3 %v240_v22  ;;  %71 = vmatmul.f32.vlgmr.msra.gmra.mxu0 %v70_v25 }
  0x18   :  { %97 = vmatmul.f32.vlgmr.msra.gmra.mxu1 %v760_v7  ;;  %264 = vmatpush.msra.mxu0 %v237_v11 }
  0x19   :  { %189 = vmatpush.msrb.mxu1 %v64_v3  ;;  %217 = vmatmul.f32.vlgmr.msrb.gmra.mxu2 %v70_v25 }
  0x1a   :  { %335 = vmatpush.msra.mxu3 %v210_v5  ;;  %410 = vmatpush.msrb.mxu2 %v383_v15 }
  0x1b   :  { %287 = vmatpush.msra.mxu1 %v210_v5  ;;  %243 = vmatmul.f32.vlgmr.msrb.gmra.mxu3 %v760_v7 }
  0x1c   :  { %433 = vmatpush.msrb.mxu3 %v356_v8 }
  0x1f   :  { %169 = vmatmul.f32.vlgmr.msrb.gmra.mxu0 %v760_v7 }
  0x20   :  { %191 = vmatmul.f32.vlgmr.msrb.gmra.mxu1 %v760_v7  ;;  %357 = vmatpush.msrb.mxu0 %v356_v8 }
  0x21   :  { %387 = vmatpush.msrb.mxu1 %v386_v28  ;;  %315 = vmatmul.f32.vlgmr.msra.gmra.mxu2 %v760_v7 }
  0x22   :  { %503 = vmatpush.msra.mxu2 %v502_v16 }
  0x23   :  { %337 = vmatmul.f32.vlgmr.msra.gmra.mxu3 %v760_v7 }
  0x24   :  { %533 = vmatpush.msra.mxu3 %v532_v30 }
  0x27   :  { %267 = vmatmul.f32.vlgmr.msra.gmra.mxu0 %v67_v12 }
  0x28   :  { %291 = vmatmul.f32.vlgmr.msra.gmra.mxu1 %v68_v17  ;;  %459 = vmatpush.msra.mxu0 %v384_v23 }
  0x29   :  { %481 = vmatpush.msra.mxu1 %v356_v8  ;;  %413 = vmatmul.f32.vlgmr.msrb.gmra.mxu2 %v67_v12 }
  0x2a   :  { %605 = vmatpush.msrb.mxu2 %v530_v27 }
  0x2b   :  { %437 = vmatmul.f32.vlgmr.msrb.gmra.mxu3 %v68_v17 }
  0x2c   :  { %627 = vmatpush.msrb.mxu3 %v502_v16 }
  0x2f   :  { %363 = vmatmul.f32.vlgmr.msrb.gmra.mxu0 %v70_v25 }
  0x30   :  { %389 = vmatmul.f32.vlgmr.msrb.gmra.mxu1 %v760_v7  ;;  %556 = vmatpush.msrb.mxu0 %v529_v24 }
  0x31   :  { %579 = vmatpush.msrb.mxu1 %v502_v16  ;;  %509 = vmatmul.f32.vlgmr.msra.gmra.mxu2 %v70_v25 }
  0x33   :  { %535 = vmatmul.f32.vlgmr.msra.gmra.mxu3 %v760_v7 }
  0x37   :  { %461 = vmatmul.f32.vlgmr.msra.gmra.mxu0 %v760_v7 }
  0x38   :  { %483 = vmatmul.f32.vlgmr.msra.gmra.mxu1 %v760_v7 }
  0x39   :  { %607 = vmatmul.f32.vlgmr.msrb.gmra.mxu2 %v760_v7 }
  0x3b   :  { %629 = vmatmul.f32.vlgmr.msrb.gmra.mxu3 %v760_v7 }
  0x3f   :  { %559 = vmatmul.f32.vlgmr.msrb.gmra.mxu0 %v67_v12 }
  0x40   :  { %583 = vmatmul.f32.vlgmr.msrb.gmra.mxu1 %v68_v17 }
  0x94   :  { %v72_v31 = vpop.f32.mrf.mxu0  ;;  %v122_v34 = vpop.f32.mrf.mxu2 }
  0x95   :  { %v98_v32 = vpop.f32.mrf.mxu1 }
  0x96   :  { %v99_v33 = vadd.f32 %v98_v32, %v72_v31  ;;  %v146_v35 = vpop.f32.mrf.mxu3 }
  0x98   :  { %v123_v36 = vadd.f32 %v122_v34, %v99_v33 }
  0x9a   :  { %v147_v37 = vadd.f32 %v146_v35, %v123_v36 }
  0x9c   :  { %v170_v38 = vpop.f32.mrf.mxu0  ;;  %v218_v41 = vpop.f32.mrf.mxu2 }
  0x9d   :  { %v192_v39 = vpop.f32.mrf.mxu1  ;;  %v171_v40 = vadd.f32 %v170_v38, %v147_v37 }
  0x9e   :  { %v244_v42 = vpop.f32.mrf.mxu3 }
  0x9f   :  { %v193_v43 = vadd.f32 %v192_v39, %v171_v40  ;;  %v245_v44 = vadd.f32 %v244_v42, %v218_v41 }
  0xa1   :  { %633 = vst [vmem:[#allocation7] sm:$0xff] %v193_v43 }
  0xa4   :  { %v268_v45 = vpop.f32.mrf.mxu0  ;;  %v316_v48 = vpop.f32.mrf.mxu2 }
  0xa5   :  { %v292_v46 = vpop.f32.mrf.mxu1  ;;  %v269_v47 = vadd.f32 %v268_v45, %v245_v44 }
  0xa6   :  { %v338_v49 = vpop.f32.mrf.mxu3 }
  0xa7   :  { %v293_v50 = vadd.f32 %v292_v46, %v269_v47 }
  0xa9   :  { %v317_v51 = vadd.f32 %v316_v48, %v293_v50 }
  0xab   :  { %v339_v52 = vadd.f32 %v338_v49, %v317_v51 }
  0xac   :  { %v364_v53 = vpop.f32.mrf.mxu0  ;;  %v414_v56 = vpop.f32.mrf.mxu2 }
  0xad   :  { %v390_v54 = vpop.f32.mrf.mxu1  ;;  %634 = vst [vmem:[#allocation7 + $0x8] sm:$0xff] %v339_v52 }
  0xae   :  { %v391_v55 = vadd.f32 %v390_v54, %v364_v53  ;;  %v438_v57 = vpop.f32.mrf.mxu3 }
  0xb0   :  { %v415_v58 = vadd.f32 %v414_v56, %v391_v55 }
  0xb2   :  { %v439_v59 = vadd.f32 %v438_v57, %v415_v58 }
  0xb4   :  { %v462_v60 = vpop.f32.mrf.mxu0  ;;  %v510_v63 = vpop.f32.mrf.mxu2 }
  0xb5   :  { %v484_v61 = vpop.f32.mrf.mxu1  ;;  %v463_v62 = vadd.f32 %v462_v60, %v439_v59 }
  0xb6   :  { %v536_v1 = vpop.f32.mrf.mxu3 }
  0xb7   :  { %v485_v0 = vadd.f32 %v484_v61, %v463_v62  ;;  %v537_v2 = vadd.f32 %v536_v1, %v510_v63 }
  0xb9   :  { %635 = vst [vmem:[#allocation7 + $0x10] sm:$0xff] %v485_v0 }
  0xbc   :  { %v560_v3 = vpop.f32.mrf.mxu0  ;;  %v608_v6 = vpop.f32.mrf.mxu2 }
  0xbd   :  { %v584_v4 = vpop.f32.mrf.mxu1  ;;  %v561_v5 = vadd.f32 %v560_v3, %v537_v2 }
  0xbe   :  { %v630_v8 = vpop.f32.mrf.mxu3 }
  0xbf   :  { %v585_v7 = vadd.f32 %v584_v4, %v561_v5 }
  0xc1   :  { %v609_v9 = vadd.f32 %v608_v6, %v585_v7 }
  0xc3   :  { %v631_v10 = vadd.f32 %v630_v8, %v609_v9 }
  0xc5   :  { %636 = vst [vmem:[#allocation7 + $0x18] sm:$0xff] %v631_v10 }
  0xc6   :  { %647 = dma.vmem_to_hbm [thread:$0]  %s643_s1, 512, %s645_s21, [#allocation4]  }
  0xc7   :  { %734 = dma.done.wait [#allocation4], 512  }
  0xc8   :  { %735 = vsyncadd [#allocation4], 4294966784 }
  0xc9   :  { %652 = vsyncpa [#allocation3], 1 }
  0xca   :  { %653 = vsyncpa [#allocation6], 1 }
  0xcb   :  { %654 = vsyncpa [#allocation4], 1 }

</bundles_post_ra>
